<compile_context>
chip_gen: v6e
topology: v6e:2x2x1
jax: 0.10.0
libtpu: 0.0.40
codegen_flags: <defaults>
</compile_context>

<pallas_src>
import functools

import jax
import jax.numpy as jnp
from jax.experimental import pallas as pl
from jax.experimental.pallas import tpu as pltpu

LANE = 128      # TPU lane width; every feature dim is zero-padded to this
N_LAYERS = 4


def _round_up(x, m):
    return (x + m - 1) // m * m


def _qnet_kernel(x_ref, w_ref, b_ref, o_ref):
    """x_ref: (TB, 128) f32, w_ref: (4, 128, 128) bf16, b_ref: (4, 128) f32,
    o_ref: (TB, 128) f32."""
    b = b_ref[...]                                    # (4, 128) f32, one small load

    h = x_ref[...].astype(jnp.bfloat16)               # feed the MXU in bf16
    # layers 1..3: bf16 matmul, f32 accumulate, f32 bias add + ReLU
    h = jnp.dot(h, w_ref[0], preferred_element_type=jnp.float32) + b[0:1]
    h = jnp.maximum(h, 0.0).astype(jnp.bfloat16)
    h = jnp.dot(h, w_ref[1], preferred_element_type=jnp.float32) + b[1:2]
    h = jnp.maximum(h, 0.0).astype(jnp.bfloat16)
    h = jnp.dot(h, w_ref[2], preferred_element_type=jnp.float32) + b[2:3]
    h = jnp.maximum(h, 0.0).astype(jnp.bfloat16)
    # layer 4: linear, no activation
    out = jnp.dot(h, w_ref[3], preferred_element_type=jnp.float32) + b[3:4]
    o_ref[...] = out.astype(o_ref.dtype)              # lane-dense, unmasked store


def pack_params(params):
    """Pack ((w1,b1)..(w4,b4)) into w_slab (4,128,128) bf16 and b_slab (4,128) f32.

    Each w_i is (in_features, out_features) (transpose of nn.Linear.weight);
    all feature dims must be <= 128 and are zero-padded to 128 lanes/sublanes.
    """
    assert len(params) == N_LAYERS
    w_slab = jnp.zeros((N_LAYERS, LANE, LANE), jnp.bfloat16)
    b_slab = jnp.zeros((N_LAYERS, LANE), jnp.float32)
    for i, (w, b) in enumerate(params):
        k_in, k_out = w.shape
        assert k_in <= LANE and k_out <= LANE, "pack_params assumes feature dims <= 128"
        w_slab = w_slab.at[i, :k_in, :k_out].set(w.astype(jnp.bfloat16))
        b_slab = b_slab.at[i, :k_out].set(b.astype(jnp.float32))
    return w_slab, b_slab


@functools.partial(jax.jit, static_argnames=("in_size", "out_size", "block_batch"))
def _qnet_forward_packed(x, w_slab, b_slab, *, in_size, out_size, block_batch):
    batch = x.shape[0]
    # Batch tile: multiple of 8 sublanes, capped at block_batch rows.
    tb = min(block_batch, _round_up(max(batch, 1), 8))
    b_pad = _round_up(batch, tb)

    # Lane-dense, zero-padded input slab (B_pad, 128).
    x_pad = jnp.zeros((b_pad, LANE), jnp.float32).at[:batch, :in_size].set(
        x.astype(jnp.float32))

    out_pad = pl.pallas_call(
        _qnet_kernel,
        out_shape=jax.ShapeDtypeStruct((b_pad, LANE), jnp.float32),
        grid_spec=pltpu.PrefetchScalarGridSpec(
            num_scalar_prefetch=0,
            grid=(b_pad // tb,),
            in_specs=[
                pl.BlockSpec((tb, LANE), lambda i: (i, 0)),                 # x tile
                pl.BlockSpec((N_LAYERS, LANE, LANE), lambda i: (0, 0, 0)),  # weights resident
                pl.BlockSpec((N_LAYERS, LANE), lambda i: (0, 0)),           # biases resident
            ],
            out_specs=pl.BlockSpec((tb, LANE), lambda i: (i, 0)),
        ),
        compiler_params=pltpu.CompilerParams(
            dimension_semantics=("parallel",)),  # shard batch tiles across TCs on v7x
    )(x_pad, w_slab, b_slab)
    return out_pad[:batch, :out_size]


def qnet_forward(x, params, *, block_batch=256):
    """Forward pass matching Linear_QNet.forward.  x: (batch, input_size) f32."""
    w_slab, b_slab = pack_params(params)
    in_size = params[0][0].shape[0]
    out_size = params[-1][0].shape[1]
    return _qnet_forward_packed(x, w_slab, b_slab, in_size=in_size,
                                out_size=out_size, block_batch=block_batch)


def init_params(key, input_size, h1, h2, h3, output_size):
    """Deterministic init mimicking PyTorch's U(-1/sqrt(fan_in), 1/sqrt(fan_in)).

    Weights are stored as (in_features, out_features) — the transpose of
    PyTorch's nn.Linear weight layout — so the kernel can do x @ W directly.
    """
    dims = [(input_size, h1), (h1, h2), (h2, h3), (h3, output_size)]
    params = []
    for fan_in, fan_out in dims:
        key, kw, kb = jax.random.split(key, 3)
        bound = 1.0 / jnp.sqrt(jnp.float32(fan_in))
        w = jax.random.uniform(kw, (fan_in, fan_out), jnp.float32, -bound, bound)
        b = jax.random.uniform(kb, (fan_out,), jnp.float32, -bound, bound)
        params.append((w, b))
    return tuple(params)


def qnet_reference(x, params):
    """Pure-JAX f32 reference for correctness checking."""
    (w1, b1), (w2, b2), (w3, b3), (w4, b4) = params
    h = jax.nn.relu(x @ w1 + b1)
    h = jax.nn.relu(h @ w2 + b2)
    h = jax.nn.relu(h @ w3 + b3)
    return h @ w4 + b4


if __name__ == "__main__":
    # Shapes consistent with the module's forward:
    # Linear_QNet(input_size=11, hidden=32, 64, 32, output=3)  (snake-game style).
    input_size, h1, h2, h3, output_size = 11, 32, 64, 32, 3

    key = jax.random.PRNGKey(0)
    key, kx = jax.random.split(key)
    params = init_params(key, input_size, h1, h2, h3, output_size)

    # Small batch (single-step inference style): one grid step.
    x_small = jax.random.normal(kx, (2, input_size), jnp.float32)
    out_small = jax.block_until_ready(qnet_forward(x_small, params))
    ref_small = qnet_reference(x_small, params)
    assert out_small.shape == (2, output_size)
    assert jnp.allclose(out_small, ref_small, atol=5e-2, rtol=1e-2), \
        "Pallas output mismatch vs reference (small batch)"

    # Larger batch (replay-buffer style): exercises the parallel batch grid.
    key, kb = jax.random.split(key)
    x_big = jax.random.normal(kb, (512, input_size), jnp.float32)
    out_big = jax.block_until_ready(qnet_forward(x_big, params))
    ref_big = qnet_reference(x_big, params)
    assert out_big.shape == (512, output_size)
    assert jnp.allclose(out_big, ref_big, atol=5e-2, rtol=1e-2), \
        "Pallas output mismatch vs reference (batched grid)"

    print("KERNEL_OK")
</pallas_src>

<mosaic_0001>
module attributes {stable_mosaic.version = 11 : i64} {
  func.func @_qnet_kernel(%arg0: i32, %arg1: memref<8x128xf32, #tpu.memory_space<vmem>>, %arg2: memref<4x128x128xbf16, #tpu.memory_space<vmem>>, %arg3: memref<4x128xf32, #tpu.memory_space<vmem>>, %arg4: memref<8x128xf32, #tpu.memory_space<vmem>>) attributes {dimension_semantics = [#tpu.dimension_semantics<parallel>], iteration_bounds = array<i64: 1>, scalar_prefetch = 0 : i64, scratch_operands = 0 : i64, tpu.core_type = #tpu.core_type<tc>, window_params = [{transform_indices = @transform_0, window_bounds = array<i64: 8, 128>}, {pipeline_mode = #tpu.pipeline_mode<synchronous>, transform_indices = @transform_1, window_bounds = array<i64: 4, 128, 128>}, {pipeline_mode = #tpu.pipeline_mode<synchronous>, transform_indices = @transform_2, window_bounds = array<i64: 4, 128>}, {transform_indices = @transform_3, window_bounds = array<i64: 8, 128>}]} {
    %c0 = arith.constant 0 : index
    %c0_0 = arith.constant 0 : index
    %0 = vector.load %arg3[%c0, %c0_0] : memref<4x128xf32, #tpu.memory_space<vmem>>, vector<4x128xf32>
    %c0_1 = arith.constant 0 : index
    %c0_2 = arith.constant 0 : index
    %1 = vector.load %arg1[%c0_1, %c0_2] : memref<8x128xf32, #tpu.memory_space<vmem>>, vector<8x128xf32>
    %2 = arith.truncf %1 : vector<8x128xf32> to vector<8x128xbf16>
    %c0_3 = arith.constant 0 : index
    %c0_4 = arith.constant 0 : index
    %c0_5 = arith.constant 0 : index
    %3 = vector.load %arg2[%c0_3, %c0_4, %c0_5] : memref<4x128x128xbf16, #tpu.memory_space<vmem>>, vector<1x128x128xbf16>
    %4 = vector.shape_cast %3 : vector<1x128x128xbf16> to vector<128x128xbf16>
    %cst = arith.constant dense<0.000000e+00> : vector<8x128xf32>
    %5 = tpu.matmul %2, %4, %cst {dimension_numbers = #tpu.dot_dimension_numbers<[1], [0], [0], [1], [0, 0, 1, 1], [], []>} : vector<8x128xbf16>, vector<128x128xbf16>, vector<8x128xf32> -> vector<8x128xf32>
    %6 = vector.extract_strided_slice %0 {offsets = [0, 0], sizes = [1, 128], strides = [1, 1]} : vector<4x128xf32> to vector<1x128xf32>
    %7 = vector.broadcast %6 : vector<1x128xf32> to vector<8x128xf32>
    %8 = arith.addf %5, %7 : vector<8x128xf32>
    %cst_6 = arith.constant 0.000000e+00 : f32
    %9 = vector.broadcast %cst_6 : f32 to vector<8x128xf32>
    %10 = arith.maximumf %8, %9 : vector<8x128xf32>
    %11 = arith.truncf %10 : vector<8x128xf32> to vector<8x128xbf16>
    %c1 = arith.constant 1 : index
    %c0_7 = arith.constant 0 : index
    %c0_8 = arith.constant 0 : index
    %12 = vector.load %arg2[%c1, %c0_7, %c0_8] : memref<4x128x128xbf16, #tpu.memory_space<vmem>>, vector<1x128x128xbf16>
    %13 = vector.shape_cast %12 : vector<1x128x128xbf16> to vector<128x128xbf16>
    %cst_9 = arith.constant dense<0.000000e+00> : vector<8x128xf32>
    %14 = tpu.matmul %11, %13, %cst_9 {dimension_numbers = #tpu.dot_dimension_numbers<[1], [0], [0], [1], [0, 0, 1, 1], [], []>} : vector<8x128xbf16>, vector<128x128xbf16>, vector<8x128xf32> -> vector<8x128xf32>
    %15 = vector.extract_strided_slice %0 {offsets = [1, 0], sizes = [1, 128], strides = [1, 1]} : vector<4x128xf32> to vector<1x128xf32>
    %16 = vector.broadcast %15 : vector<1x128xf32> to vector<8x128xf32>
    %17 = arith.addf %14, %16 : vector<8x128xf32>
    %cst_10 = arith.constant 0.000000e+00 : f32
    %18 = vector.broadcast %cst_10 : f32 to vector<8x128xf32>
    %19 = arith.maximumf %17, %18 : vector<8x128xf32>
    %20 = arith.truncf %19 : vector<8x128xf32> to vector<8x128xbf16>
    %c2 = arith.constant 2 : index
    %c0_11 = arith.constant 0 : index
    %c0_12 = arith.constant 0 : index
    %21 = vector.load %arg2[%c2, %c0_11, %c0_12] : memref<4x128x128xbf16, #tpu.memory_space<vmem>>, vector<1x128x128xbf16>
    %22 = vector.shape_cast %21 : vector<1x128x128xbf16> to vector<128x128xbf16>
    %cst_13 = arith.constant dense<0.000000e+00> : vector<8x128xf32>
    %23 = tpu.matmul %20, %22, %cst_13 {dimension_numbers = #tpu.dot_dimension_numbers<[1], [0], [0], [1], [0, 0, 1, 1], [], []>} : vector<8x128xbf16>, vector<128x128xbf16>, vector<8x128xf32> -> vector<8x128xf32>
    %24 = vector.extract_strided_slice %0 {offsets = [2, 0], sizes = [1, 128], strides = [1, 1]} : vector<4x128xf32> to vector<1x128xf32>
    %25 = vector.broadcast %24 : vector<1x128xf32> to vector<8x128xf32>
    %26 = arith.addf %23, %25 : vector<8x128xf32>
    %cst_14 = arith.constant 0.000000e+00 : f32
    %27 = vector.broadcast %cst_14 : f32 to vector<8x128xf32>
    %28 = arith.maximumf %26, %27 : vector<8x128xf32>
    %29 = arith.truncf %28 : vector<8x128xf32> to vector<8x128xbf16>
    %c3 = arith.constant 3 : index
    %c0_15 = arith.constant 0 : index
    %c0_16 = arith.constant 0 : index
    %30 = vector.load %arg2[%c3, %c0_15, %c0_16] : memref<4x128x128xbf16, #tpu.memory_space<vmem>>, vector<1x128x128xbf16>
    %31 = vector.shape_cast %30 : vector<1x128x128xbf16> to vector<128x128xbf16>
    %cst_17 = arith.constant dense<0.000000e+00> : vector<8x128xf32>
    %32 = tpu.matmul %29, %31, %cst_17 {dimension_numbers = #tpu.dot_dimension_numbers<[1], [0], [0], [1], [0, 0, 1, 1], [], []>} : vector<8x128xbf16>, vector<128x128xbf16>, vector<8x128xf32> -> vector<8x128xf32>
    %33 = vector.extract_strided_slice %0 {offsets = [3, 0], sizes = [1, 128], strides = [1, 1]} : vector<4x128xf32> to vector<1x128xf32>
    %34 = vector.broadcast %33 : vector<1x128xf32> to vector<8x128xf32>
    %35 = arith.addf %32, %34 : vector<8x128xf32>
    %c0_18 = arith.constant 0 : index
    %c0_19 = arith.constant 0 : index
    %36 = vector.load %arg4[%c0_18, %c0_19] : memref<8x128xf32, #tpu.memory_space<vmem>>, vector<8x128xf32>
    tpu.vector_store %arg4[%c0_18, %c0_19], %35 {strides = array<i32>} : memref<8x128xf32, #tpu.memory_space<vmem>>, vector<8x128xf32>,
    return
  }
  func.func @transform_0(%arg0: i32) -> (i32, i32) {
    %c0_i32 = arith.constant 0 : i32
    %c0_i32_0 = arith.constant 0 : i32
    return %arg0, %c0_i32 : i32, i32
  }
  func.func @transform_1(%arg0: i32) -> (i32, i32, i32) {
    %c0_i32 = arith.constant 0 : i32
    %c0_i32_0 = arith.constant 0 : i32
    %c0_i32_1 = arith.constant 0 : i32
    %c0_i32_2 = arith.constant 0 : i32
    return %c0_i32, %c0_i32_0, %c0_i32_1 : i32, i32, i32
  }
  func.func @transform_2(%arg0: i32) -> (i32, i32) {
    %c0_i32 = arith.constant 0 : i32
    %c0_i32_0 = arith.constant 0 : i32
    %c0_i32_1 = arith.constant 0 : i32
    return %c0_i32, %c0_i32_0 : i32, i32
  }
  func.func @transform_3(%arg0: i32) -> (i32, i32) {
    %c0_i32 = arith.constant 0 : i32
    %c0_i32_0 = arith.constant 0 : i32
    return %arg0, %c0_i32 : i32, i32
  }
}

</mosaic_0001>

<bundles_post_ra>
// kernel: _qnet_forward_packed.1
= control target key start
LH: loop header
LB: loop body
LE: loop exit
PB: predicated region body
PF: predicated region fallthrough
CT: control target
= control target key end

     0   :  { %8 = vsyncpa [#allocation3], 0  ;;  %s686_s12 = smov [#allocation2]   ;;  %s769_s0 = inlined_call_operand.vmem [shape: f32[8,128], index: 0, kind: input, shape index: {}]   ;;  %s770_s1 = inlined_call_operand.hbm [shape: bf16[4,128,128], index: 1, kind: input, shape index: {}]   ;;  %s771_s2 = inlined_call_operand.vmem [shape: f32[4,128], index: 2, kind: input, shape index: {}]   ;;  %s772_s3 = inlined_call_operand.vmem [shape: f32[8,128], index: 3, kind: output, shape index: {}]  }
   0x1   :  { %s16_s13 = sshll.u32 %s686_s12, 4  ;;  %s17_s13 = int_to_ptr.vmem [resolvable:$true] %s16_s13 }
   0x2   :  { %s672_s14 = scalar_lea.vmem %s17_s13, 4096  ;;  %p677_p1 = scmp.lt.s32.totalorder %s17_s13, %s17_s13 }
   0x3   :  { %p673_p0 = scmp.ne.s32.totalorder %s17_s13, %s672_s14  ;;  %p678_p2 = scmp.lt.s32.totalorder %s672_s14, %s672_s14 }
   0x5   :  { %p679_p3 = por %p678_p2, %p677_p1 }
   0x7   :  { %p680_p4 = pnand %p679_p3, %p673_p0 }
   0x9   :  { %683 = shalt.err (!%p680_p4)
}
   0xa   :  { %s687_s15 = smov 64   ;;  %s688_s16 = smov 4  }
   0xb   :  { %22 = dma.hbm_to_vmem [thread:$0]  %s770_s1, 4096, %s17_s13, [#allocation3], %s687_s15, %s687_s15, %s688_s16  }
   0xc   :  { %684 = dma.done.wait [#allocation3], 4096  }
   0xd   :  { %685 = vsyncadd [#allocation3], 4294963200  ;;  %v689_v0 = vmov 0.0   ;;  %vm690_vm0 = vmmov 0   ;;  %v632_v1 = vld [vmem:[#allocation2 + $0x38] sm:$0xff]   ;;  %v633_v2 = vld [vmem:[#allocation2 + $0x30] sm:$0xff]   ;;  %v48_v25 = vlaneseq }
   0xe   :  { %547 = vmatprep.subr.bf16.mxu0 %v689_v0  ;;  %563 = vmatprep.mubr.msk.bf16.mxu0 %vm690_vm0, %v689_v0  ;;  %v634_v3 = vld [vmem:[#allocation2 + $0x28] sm:$0xff]   ;;  %v640_v4 = vld [vmem:[#allocation2 + $0x78] sm:$0xff]   ;;  %v635_v5 = vld [vmem:[#allocation2 + $0x20] sm:$0xff]  }
   0xf   :  { %567 = vmatprep.subr.bf16.mxu1 %v689_v0  ;;  %583 = vmatprep.mubr.msk.bf16.mxu1 %vm690_vm0, %v689_v0  ;;  %v641_v6 = vld [vmem:[#allocation2 + $0x70] sm:$0xff]   ;;  %v636_v7 = vld [vmem:[#allocation2 + $0x18] sm:$0xff]   ;;  %v642_v8 = vld [vmem:[#allocation2 + $0x68] sm:$0xff]   ;;  %v747_v26 = vshrl.u32 %v48_v25, 7 }
  0x10   :  { %548 = vmatpush3.bf16.msra.mxu0 %v632_v1  ;;  %568 = vmatpush3.bf16.msra.mxu1 %v640_v4  ;;  %v637_v9 = vld [vmem:[#allocation2 + $0x10] sm:$0xff]   ;;  %v643_v10 = vld [vmem:[#allocation2 + $0x60] sm:$0xff]   ;;  %v638_v11 = vld [vmem:[#allocation2 + $0x8] sm:$0xff]  }
  0x11   :  { %549 = vmatprep.subr.bf16.mxu0 %v689_v0  ;;  %569 = vmatprep.subr.bf16.mxu1 %v689_v0  ;;  %v644_v12 = vld [vmem:[#allocation2 + $0x58] sm:$0xff]   ;;  %v639_v13 = vld [vmem:[#allocation2] sm:$0xff]   ;;  %v645_v15 = vld [vmem:[#allocation2 + $0x50] sm:$0xff]   ;;  %v50_v27 = vsub.s32 0, %v747_v26  ;;  %v161_v45 = vsub.s32 1, %v747_v26  ;;  %v272_v56 = vsub.s32 2, %v747_v26 }
  0x12   :  { %v30_v14 = vld [vmem:[%s769_s0] sm:$0xff]  ;;  %v646_v17 = vld [vmem:[#allocation2 + $0x48] sm:$0xff]   ;;  %v648_v19 = vld [vmem:[#allocation2 + $0xb8] sm:$0xff]  }
  0x13   :  { %v31_v16 = vpack.c.bf16 %v30_v14, %v30_v14  ;;  %v647_v18 = vld [vmem:[#allocation2 + $0x40] sm:$0xff]   ;;  %v649_v20 = vld [vmem:[#allocation2 + $0xb0] sm:$0xff]   ;;  %v650_v21 = vld [vmem:[#allocation2 + $0xa8] sm:$0xff]  }
  0x14   :  { %550 = vmatpush3.bf16.msra.mxu0 %v633_v2  ;;  %570 = vmatpush3.bf16.msra.mxu1 %v641_v6  ;;  %v651_v22 = vld [vmem:[#allocation2 + $0xa0] sm:$0xff]   ;;  %v652_v23 = vld [vmem:[#allocation2 + $0x98] sm:$0xff]   ;;  %v653_v24 = vld [vmem:[#allocation2 + $0x90] sm:$0xff]   ;;  %v383_v2 = vsub.s32 3, %v747_v26 }
  0x15   :  { %551 = vmatprep.subr.bf16.mxu0 %v689_v0  ;;  %571 = vmatprep.subr.bf16.mxu1 %v689_v0  ;;  %v29_v28 = vld [vmem:[%s771_s2] sm:$0xf]  ;;  %v654_v37 = vld [vmem:[#allocation2 + $0x88] sm:$0xff]   ;;  %v656_v39 = vld [vmem:[#allocation2 + $0xf8] sm:$0xff]  }
  0x16   :  { %v51_v29 = vrot.slane %v29_v28, %v50_v27  ;;  %v655_v38 = vld [vmem:[#allocation2 + $0x80] sm:$0xff]   ;;  %v657_v40 = vld [vmem:[#allocation2 + $0xf0] sm:$0xff]   ;;  %v658_v41 = vld [vmem:[#allocation2 + $0xe8] sm:$0xff]   ;;  %v162_v46 = vrot.slane %v29_v28, %v161_v45  ;;  %v273_v57 = vrot.slane %v29_v28, %v272_v56 }
  0x17   :  { %v659_v42 = vld [vmem:[#allocation2 + $0xe0] sm:$0xff]   ;;  %v660_v43 = vld [vmem:[#allocation2 + $0xd8] sm:$0xff]   ;;  %v661_v44 = vld [vmem:[#allocation2 + $0xd0] sm:$0xff]  }
  0x18   :  { %552 = vmatpush3.bf16.msra.mxu0 %v634_v3  ;;  %572 = vmatpush3.bf16.msra.mxu1 %v642_v8  ;;  %v662_v54 = vld [vmem:[#allocation2 + $0xc8] sm:$0xff]   ;;  %v663_v55 = vld [vmem:[#allocation2 + $0xc0] sm:$0xff]   ;;  %v384_v3 = vrot.slane %v29_v28, %v383_v2 }
  0x19   :  { %553 = vmatprep.subr.bf16.mxu0 %v689_v0  ;;  %573 = vmatprep.subr.bf16.mxu1 %v689_v0 }
  0x1c   :  { %554 = vmatpush3.bf16.msra.mxu0 %v635_v5  ;;  %574 = vmatpush3.bf16.msra.mxu1 %v643_v10 }
  0x1d   :  { %555 = vmatprep.subr.bf16.mxu0 %v689_v0  ;;  %575 = vmatprep.subr.bf16.mxu1 %v689_v0 }
  0x20   :  { %556 = vmatpush3.bf16.msra.mxu0 %v636_v7  ;;  %576 = vmatpush3.bf16.msra.mxu1 %v644_v12 }
  0x21   :  { %557 = vmatprep.subr.bf16.mxu0 %v689_v0  ;;  %577 = vmatprep.subr.bf16.mxu1 %v689_v0 }
  0x24   :  { %558 = vmatpush3.bf16.msra.mxu0 %v637_v9  ;;  %578 = vmatpush3.bf16.msra.mxu1 %v645_v15 }
  0x25   :  { %559 = vmatprep.subr.bf16.mxu0 %v689_v0  ;;  %579 = vmatprep.subr.bf16.mxu1 %v689_v0 }
  0x28   :  { %560 = vmatpush3.bf16.msra.mxu0 %v638_v11  ;;  %580 = vmatpush3.bf16.msra.mxu1 %v646_v17 }
  0x29   :  { %561 = vmatprep.subr.bf16.mxu0 %v689_v0  ;;  %581 = vmatprep.subr.bf16.mxu1 %v689_v0 }
  0x2c   :  { %562 = vmatpush3.bf16.msra.mxu0 %v639_v13  ;;  %582 = vmatpush3.bf16.msra.mxu1 %v647_v18 }
  0x2d   :  { %587 = vmatprep.subr.bf16.mxu0 %v689_v0  ;;  %607 = vmatprep.subr.bf16.mxu1 %v689_v0 }
  0x2f   :  { %564 = vmatmul.mubr.bf16.vlgmr.msra.gmra.mxu0 %v31_v16 }
  0x30   :  { %603 = vmatprep.mubr.msk.bf16.mxu0 %vm690_vm0, %v689_v0  ;;  %588 = vmatpush3.bf16.msra.mxu0 %v648_v19 }
  0x31   :  { %589 = vmatprep.subr.bf16.mxu0 %v689_v0 }
  0x34   :  { %590 = vmatpush3.bf16.msra.mxu0 %v649_v20 }
  0x35   :  { %591 = vmatprep.subr.bf16.mxu0 %v689_v0 }
  0x38   :  { %592 = vmatpush3.bf16.msra.mxu0 %v650_v21 }
  0x39   :  { %593 = vmatprep.subr.bf16.mxu0 %v689_v0 }
  0x3c   :  { %594 = vmatpush3.bf16.msra.mxu0 %v651_v22 }
  0x3d   :  { %595 = vmatprep.subr.bf16.mxu0 %v689_v0 }
  0x40   :  { %596 = vmatpush3.bf16.msra.mxu0 %v652_v23 }
  0x41   :  { %597 = vmatprep.subr.bf16.mxu0 %v689_v0 }
  0x44   :  { %598 = vmatpush3.bf16.msra.mxu0 %v653_v24 }
  0x45   :  { %599 = vmatprep.subr.bf16.mxu0 %v689_v0 }
  0x48   :  { %600 = vmatpush3.bf16.msra.mxu0 %v654_v37 }
  0x49   :  { %601 = vmatprep.subr.bf16.mxu0 %v689_v0 }
  0x4c   :  { %602 = vmatpush3.bf16.msra.mxu0 %v655_v38 }
  0xef   :  { %v134_v30 = vpop.f32.mrf.mxu0 }
  0xf0   :  { %v135_v31 = vadd.f32 %v134_v30, %v51_v29 }
  0xf1   :  { %v565_v32 = vpop.f32.mrf.mxu0 }
  0xf2   :  { %v140_v33 = vmax.f32 %v135_v31, 0.0 }
  0xf3   :  { %v137_v34 = vpop.f32.mrf.mxu0 }
  0xf4   :  { %v141_v35 = vpack.c.bf16 %v140_v33, %v140_v33 }
  0xf5   :  { %v566_v36 = vpop.f32.mrf.mxu0 }
  0xf6   :  { %584 = vmatmul.mubr.bf16.vlgmr.msra.gmra.mxu1 %v141_v35 }
  0xf7   :  { %623 = vmatprep.mubr.msk.bf16.mxu1 %vm690_vm0, %v689_v0  ;;  %608 = vmatpush3.bf16.msra.mxu1 %v656_v39 }
  0xf8   :  { %609 = vmatprep.subr.bf16.mxu1 %v689_v0 }
  0xfb   :  { %610 = vmatpush3.bf16.msra.mxu1 %v657_v40 }
  0xfc   :  { %611 = vmatprep.subr.bf16.mxu1 %v689_v0 }
  0xff   :  { %612 = vmatpush3.bf16.msra.mxu1 %v658_v41 }
 0x100   :  { %613 = vmatprep.subr.bf16.mxu1 %v689_v0 }
 0x103   :  { %614 = vmatpush3.bf16.msra.mxu1 %v659_v42 }
 0x104   :  { %615 = vmatprep.subr.bf16.mxu1 %v689_v0 }
 0x107   :  { %616 = vmatpush3.bf16.msra.mxu1 %v660_v43 }
 0x108   :  { %617 = vmatprep.subr.bf16.mxu1 %v689_v0 }
 0x10b   :  { %618 = vmatpush3.bf16.msra.mxu1 %v661_v44 }
 0x10c   :  { %619 = vmatprep.subr.bf16.mxu1 %v689_v0 }
 0x10f   :  { %620 = vmatpush3.bf16.msra.mxu1 %v662_v54 }
 0x110   :  { %621 = vmatprep.subr.bf16.mxu1 %v689_v0 }
 0x113   :  { %622 = vmatpush3.bf16.msra.mxu1 %v663_v55 }
 0x1b6   :  { %v245_v47 = vpop.f32.mrf.mxu1 }
 0x1b7   :  { %v246_v48 = vadd.f32 %v245_v47, %v162_v46 }
 0x1b8   :  { %v585_v49 = vpop.f32.mrf.mxu1 }
 0x1b9   :  { %v251_v50 = vmax.f32 %v246_v48, 0.0 }
 0x1ba   :  { %v248_v51 = vpop.f32.mrf.mxu1 }
 0x1bb   :  { %v252_v52 = vpack.c.bf16 %v251_v50, %v251_v50 }
 0x1bc   :  { %v586_v53 = vpop.f32.mrf.mxu1 }
 0x1bd   :  { %604 = vmatmul.mubr.bf16.vlgmr.msra.gmra.mxu0 %v252_v52 }
 0x27d   :  { %v356_v58 = vpop.f32.mrf.mxu0 }
 0x27e   :  { %v357_v59 = vadd.f32 %v356_v58, %v273_v57 }
 0x27f   :  { %v605_v60 = vpop.f32.mrf.mxu0 }
 0x280   :  { %v362_v61 = vmax.f32 %v357_v59, 0.0 }
 0x281   :  { %v359_v62 = vpop.f32.mrf.mxu0 }
 0x282   :  { %v363_v63 = vpack.c.bf16 %v362_v61, %v362_v61 }
 0x283   :  { %v606_v1 = vpop.f32.mrf.mxu0 }
 0x284   :  { %624 = vmatmul.mubr.bf16.vlgmr.msra.gmra.mxu1 %v363_v63 }
 0x344   :  { %v467_v4 = vpop.f32.mrf.mxu1 }
 0x345   :  { %v468_v5 = vadd.f32 %v467_v4, %v384_v3 }
 0x346   :  { %v625_v6 = vpop.f32.mrf.mxu1 }
 0x347   :  { %473 = vst [vmem:[%s772_s3] sm:$0xff] %v468_v5 }
 0x348   :  { %v470_v0 = vpop.f32.mrf.mxu1 }
 0x34a   :  { %v626_v7 = vpop.f32.mrf.mxu1 }
 0x34b   :  { %478 = vsyncpa [#allocation3], 1 }

</bundles_post_ra>
